<compile_context>
chip_gen: v7x
topology: tpu7x:2x2x1
jax: 0.10.0
libtpu: 0.0.40
codegen_flags: <defaults>
</compile_context>

<pallas_src>
import functools

import jax
import jax.numpy as jnp
from jax import lax
from jax.experimental import pallas as pl
from jax.experimental.pallas import tpu as pltpu


def _round_up(x, m):
    return ((x + m - 1) // m) * m


def _cdiv(a, b):
    return -(-a // b)


def _default_n_split():
    """2 partial-sum splits on multi-TensorCore chips, 1 on single-TC chips."""
    try:
        kind = jax.devices()[0].device_kind.lower()
    except Exception:
        return 2
    if any(tag in kind for tag in ("lite", "v5e", "v6e", "v6", "v2", "v3")):
        return 1
    return 2


def _mlsm_partial_sum_kernel(x_ref, t_ref, w_ref, o_ref, acc_ref, *,
                             tiles_per_split, block_rows, width,
                             n_full_rows, tail):
    s = pl.program_id(0)   # split index ("parallel" axis, one per TensorCore)
    i = pl.program_id(1)   # tile index within the split (reduction axis)

    @pl.when(i == 0)
    def _():
        acc_ref[...] = jnp.zeros_like(acc_ref)

    x = x_ref[...].astype(jnp.float32)          # (block_rows, width)
    t = t_ref[...].astype(jnp.float32)          # (block_rows, width)

    # Exact forward semantics of the PyTorch module (unweighted; weight applied
    # once in the epilogue since sum_r sum_c w_c*L_rc == sum_c w_c * sum_r L_rc).
    prob = jax.nn.sigmoid(x)
    loss = -(t * jnp.log(prob + 1e-8) + (1.0 - t) * jnp.log(1.0 - prob + 1e-8))

    groups = block_rows // 8
    row0 = (s * tiles_per_split + i) * block_rows

    def _accumulate(l):
        # Fold the tile down to (8, width) with pure vreg-to-vreg VPU adds;
        # the cross-lane reduce happens only once, in the epilogue.
        acc_ref[...] += l.reshape(groups, 8, width).sum(axis=0)

    # Only tiles that overlap the flat-tail padding pay for the mask.
    needs_mask = (row0 + block_rows) > n_full_rows

    @pl.when(jnp.logical_not(needs_mask))
    def _():
        _accumulate(loss)

    @pl.when(needs_mask)
    def _():
        g_row = row0 + lax.broadcasted_iota(jnp.int32, (block_rows, width), 0)
        if tail == 0:
            valid = g_row < n_full_rows
        else:
            col = lax.broadcasted_iota(jnp.int32, (block_rows, width), 1)
            valid = (g_row < n_full_rows) | ((g_row == n_full_rows) & (col < tail))
        _accumulate(jnp.where(valid, loss, 0.0))

    @pl.when(i == tiles_per_split - 1)
    def _():
        w = w_ref[...].astype(jnp.float32)                  # (1, width)
        partial = jnp.sum(acc_ref[...] * w)                 # single XLU reduce
        o_ref[...] = jnp.broadcast_to(partial, o_ref.shape).astype(jnp.float32)


def multi_label_soft_margin_loss(x, target, weight=None, *, reduction="mean",
                                 block_rows=None, n_split=None):
    """Pallas implementation of CustomMultiLabelSoftMarginLoss."""
    n, c = x.shape
    assert target.shape == (n, c)
    n_elems = n * c

    # Lane-dense folding: if C divides 128, fold rows so the lane dim is 128.
    fold = (128 // c) if (c < 128 and 128 % c == 0) else 1
    width = c * fold

    if weight is None:
        w = jnp.ones((1, c), dtype=jnp.float32)
    else:
        w = jnp.asarray(weight, dtype=jnp.float32).reshape(1, c)
    if fold > 1:
        w = jnp.tile(w, (1, fold))              # (1, width), repeats every C lanes

    rows_real = _cdiv(n_elems, width)
    n_full_rows = n_elems // width              # fully-valid rows
    tail = n_elems % width                      # valid lanes in the partial row

    if n_split is None:
        n_split = _default_n_split()
    n_split = max(1, int(n_split))

    # Sublane multiple for the narrowest streamed dtype (f32:8, bf16:16, int8:32).
    itemsize = min(jnp.dtype(x.dtype).itemsize, jnp.dtype(target.dtype).itemsize)
    sub = max(8, 32 // max(1, itemsize))

    if block_rows is None:
        # Size each streamed input tile to ~2 MiB (f32 accounting) — measured
        # BlockSpec data needs >=512 KiB-2 MiB tiles to hit the HBM roofline.
        target_tile_bytes = 2 << 20
        block_rows = max(sub, (target_tile_bytes // (width * 4)) // sub * sub)
    block_rows = max(sub, _round_up(block_rows, sub))
    block_rows = min(block_rows, _round_up(_cdiv(rows_real, n_split), sub))

    tiles_per_split = max(1, _cdiv(rows_real, n_split * block_rows))
    rows_pad = n_split * tiles_per_split * block_rows
    total_pad = rows_pad * width

    def _prep(a):
        flat = a.reshape(-1)
        if total_pad != n_elems:
            flat = jnp.pad(flat, (0, total_pad - n_elems))
        return flat.reshape(rows_pad, width)

    x2 = _prep(x)
    t2 = _prep(target)

    kernel = functools.partial(
        _mlsm_partial_sum_kernel,
        tiles_per_split=tiles_per_split, block_rows=block_rows, width=width,
        n_full_rows=n_full_rows, tail=tail)

    # 2 streamed inputs x 2 pipeline buffers (4 tiles) + elementwise temporaries
    # (budgeted ~12 tiles) + small (8, width) accumulator + slack. Cap at 48 MiB
    # so the per-core budget also fits v7x's 64 MiB VMEM.
    tile_bytes = block_rows * width * 4
    vmem_limit = int(min(max(16 * tile_bytes + (4 << 20), 16 << 20), 48 << 20))

    cost = pl.CostEstimate(
        flops=10 * n_elems,
        transcendentals=3 * n_elems,
        bytes_accessed=(jnp.dtype(x.dtype).itemsize
                        + jnp.dtype(target.dtype).itemsize) * n_elems)

    out = pl.pallas_call(
        kernel,
        out_shape=jax.ShapeDtypeStruct((n_split * 8, 128), jnp.float32),
        grid_spec=pltpu.PrefetchScalarGridSpec(
            num_scalar_prefetch=0,
            grid=(n_split, tiles_per_split),
            in_specs=[
                pl.BlockSpec((block_rows, width),
                             lambda s, i: (s * tiles_per_split + i, 0)),
                pl.BlockSpec((block_rows, width),
                             lambda s, i: (s * tiles_per_split + i, 0)),
                pl.BlockSpec((1, width), lambda s, i: (0, 0)),   # resident weight
            ],
            out_specs=pl.BlockSpec((8, 128), lambda s, i: (s, 0)),
            scratch_shapes=[pltpu.VMEM((8, width), jnp.float32)],
        ),
        compiler_params=pltpu.CompilerParams(
            dimension_semantics=("parallel", "arbitrary"),
            vmem_limit_bytes=vmem_limit,
        ),
        cost_estimate=cost,
    )(x2, t2, w)

    total = jnp.sum(out[::8, 0])                # combine per-split partial sums
    if reduction == "mean":
        return total / jnp.float32(n * c)
    elif reduction == "sum":
        # mean over classes per sample, then sum over batch == total / C.
        return total / jnp.float32(c)
    else:
        # TODO(synk): reduction='none' (per-sample vector output) not implemented here.
        raise NotImplementedError("reduction='none' not supported by this kernel")


def _reference(x, target, weight, reduction="mean"):
    prob = jax.nn.sigmoid(x.astype(jnp.float32))
    t = target.astype(jnp.float32)
    loss = -(t * jnp.log(prob + 1e-8) + (1.0 - t) * jnp.log(1.0 - prob + 1e-8))
    if weight is not None:
        loss = loss * weight[None, :]
    per_row = jnp.mean(loss, axis=1)
    return jnp.mean(per_row) if reduction == "mean" else jnp.sum(per_row)


if __name__ == "__main__":
    key = jax.random.PRNGKey(0)
    k1, k2 = jax.random.split(key)

    N, C = 16, 32                                    # small multi-label problem
    x = jax.random.normal(k1, (N, C), dtype=jnp.float32)
    target = (jax.random.uniform(k2, (N, C)) > 0.5).astype(jnp.float32)
    weight = jnp.linspace(0.5, 1.5, C, dtype=jnp.float32)

    loss_mean = jax.block_until_ready(
        multi_label_soft_margin_loss(x, target, weight, reduction="mean"))
    ref_mean = _reference(x, target, weight, "mean")
    assert jnp.allclose(loss_mean, ref_mean, rtol=1e-5, atol=1e-6), (loss_mean, ref_mean)

    loss_sum = jax.block_until_ready(
        multi_label_soft_margin_loss(x, target, weight, reduction="sum"))
    ref_sum = _reference(x, target, weight, "sum")
    assert jnp.allclose(loss_sum, ref_sum, rtol=1e-5, atol=1e-5), (loss_sum, ref_sum)

    print("KERNEL_OK")
</pallas_src>

<mosaic_0001>
module attributes {stable_mosaic.version = 11 : i64} {
  func.func @_mlsm_partial_sum_kernel(%arg0: i32, %arg1: i32, %arg2: memref<8x128xf32, #tpu.memory_space<vmem>>, %arg3: memref<8x128xf32, #tpu.memory_space<vmem>>, %arg4: memref<1x128xf32, #tpu.memory_space<vmem>>, %arg5: memref<8x128xf32, #tpu.memory_space<vmem>>, %arg6: memref<8x128xf32, #tpu.memory_space<vmem>>) attributes {dimension_semantics = [#tpu.dimension_semantics<parallel>, #tpu.dimension_semantics<arbitrary>], iteration_bounds = array<i64: 2, 1>, scalar_prefetch = 0 : i64, scratch_operands = 1 : i64, tpu.core_type = #tpu.core_type<tc>, window_params = [{transform_indices = @transform_0, window_bounds = array<i64: 8, 128>}, {transform_indices = @transform_1, window_bounds = array<i64: 8, 128>}, {pipeline_mode = #tpu.pipeline_mode<synchronous>, transform_indices = @transform_2, window_bounds = array<i64: 1, 128>}, {transform_indices = @transform_3, window_bounds = array<i64: 8, 128>}]} {
    %c0_i32 = arith.constant 0 : i32
    %0 = arith.cmpi eq, %arg1, %c0_i32 : i32
    %1 = arith.extui %0 : i1 to i32
    %c0_i32_0 = arith.constant 0 : i32
    %2 = arith.cmpi ne, %1, %c0_i32_0 : i32
    scf.if %2 {
      %cst_14 = arith.constant 0.000000e+00 : f32
      %38 = vector.broadcast %cst_14 : f32 to vector<8x128xf32>
      %c0_15 = arith.constant 0 : index
      %c0_16 = arith.constant 0 : index
      %39 = vector.load %arg6[%c0_15, %c0_16] : memref<8x128xf32, #tpu.memory_space<vmem>>, vector<8x128xf32>
      tpu.vector_store %arg6[%c0_15, %c0_16], %38 {strides = array<i32>} : memref<8x128xf32, #tpu.memory_space<vmem>>, vector<8x128xf32>,
    } else {
    }
    %c0 = arith.constant 0 : index
    %c0_1 = arith.constant 0 : index
    %3 = vector.load %arg2[%c0, %c0_1] : memref<8x128xf32, #tpu.memory_space<vmem>>, vector<8x128xf32>
    %c0_2 = arith.constant 0 : index
    %c0_3 = arith.constant 0 : index
    %4 = vector.load %arg3[%c0_2, %c0_3] : memref<8x128xf32, #tpu.memory_space<vmem>>, vector<8x128xf32>
    %5 = arith.negf %3 : vector<8x128xf32>
    %6 = math.exp %5 : vector<8x128xf32>
    %cst = arith.constant 1.000000e+00 : f32
    %7 = vector.broadcast %cst : f32 to vector<8x128xf32>
    %8 = arith.addf %7, %6 : vector<8x128xf32>
    %9 = arith.divf %7, %8 : vector<8x128xf32>
    %cst_4 = arith.constant 9.99999993E-9 : f32
    %10 = vector.broadcast %cst_4 : f32 to vector<8x128xf32>
    %11 = arith.addf %9, %10 : vector<8x128xf32>
    %12 = math.log %11 : vector<8x128xf32>
    %13 = arith.mulf %4, %12 : vector<8x128xf32>
    %cst_5 = arith.constant 1.000000e+00 : f32
    %14 = vector.broadcast %cst_5 : f32 to vector<8x128xf32>
    %15 = arith.subf %14, %4 : vector<8x128xf32>
    %cst_6 = arith.constant 1.000000e+00 : f32
    %16 = vector.broadcast %cst_6 : f32 to vector<8x128xf32>
    %17 = arith.subf %16, %9 : vector<8x128xf32>
    %cst_7 = arith.constant 9.99999993E-9 : f32
    %18 = vector.broadcast %cst_7 : f32 to vector<8x128xf32>
    %19 = arith.addf %17, %18 : vector<8x128xf32>
    %20 = math.log %19 : vector<8x128xf32>
    %21 = arith.mulf %15, %20 : vector<8x128xf32>
    %22 = arith.addf %13, %21 : vector<8x128xf32>
    %cst_8 = arith.constant 0.000000e+00 : f32
    %23 = vector.broadcast %cst_8 : f32 to vector<8x128xf32>
    %24 = arith.subf %23, %22 : vector<8x128xf32>
    %c1_i32 = arith.constant 1 : i32
    %25 = arith.muli %arg0, %c1_i32 : i32
    %26 = arith.addi %25, %arg1 : i32
    %c8_i32 = arith.constant 8 : i32
    %27 = arith.muli %26, %c8_i32 : i32
    %c8_i32_9 = arith.constant 8 : i32
    %28 = arith.addi %27, %c8_i32_9 : i32
    %c4_i32 = arith.constant 4 : i32
    %29 = arith.cmpi sgt, %28, %c4_i32 : i32
    %true = arith.constant true
    %30 = arith.xori %29, %true : i1
    %31 = arith.extui %30 : i1 to i32
    %c0_i32_10 = arith.constant 0 : i32
    %32 = arith.cmpi ne, %31, %c0_i32_10 : i32
    scf.if %32 {
      %c0_14 = arith.constant 0 : index
      %c0_15 = arith.constant 0 : index
      %38 = vector.load %arg6[%c0_14, %c0_15] : memref<8x128xf32, #tpu.memory_space<vmem>>, vector<8x128xf32>
      %39 = vector.shape_cast %24 : vector<8x128xf32> to vector<1x8x128xf32>
      %cst_16 = arith.constant dense<0.000000e+00> : vector<8x128xf32>
      %40 = vector.multi_reduction <add>, %39, %cst_16 [0] : vector<1x8x128xf32> to vector<8x128xf32>
      %41 = arith.addf %38, %40 : vector<8x128xf32>
      %c0_17 = arith.constant 0 : index
      %c0_18 = arith.constant 0 : index
      %42 = vector.load %arg6[%c0_17, %c0_18] : memref<8x128xf32, #tpu.memory_space<vmem>>, vector<8x128xf32>
      tpu.vector_store %arg6[%c0_17, %c0_18], %41 {strides = array<i32>} : memref<8x128xf32, #tpu.memory_space<vmem>>, vector<8x128xf32>,
    } else {
    }
    %33 = arith.extui %29 : i1 to i32
    %c0_i32_11 = arith.constant 0 : i32
    %34 = arith.cmpi ne, %33, %c0_i32_11 : i32
    scf.if %34 {
      %38 = tpu.iota {dimensions = array<i32: 0>} : vector<8x128xi32>
      %39 = vector.broadcast %27 : i32 to vector<8x128xi32>
      %40 = arith.addi %39, %38 : vector<8x128xi32>
      %c4_i32_14 = arith.constant 4 : i32
      %41 = vector.broadcast %c4_i32_14 : i32 to vector<8x128xi32>
      %42 = arith.cmpi slt, %40, %41 : vector<8x128xi32>
      %cst_15 = arith.constant 0.000000e+00 : f32
      %43 = vector.broadcast %cst_15 : f32 to vector<8x128xf32>
      %44 = arith.select %42, %24, %43 : vector<8x128xi1>, vector<8x128xf32>
      %c0_16 = arith.constant 0 : index
      %c0_17 = arith.constant 0 : index
      %45 = vector.load %arg6[%c0_16, %c0_17] : memref<8x128xf32, #tpu.memory_space<vmem>>, vector<8x128xf32>
      %46 = vector.shape_cast %44 : vector<8x128xf32> to vector<1x8x128xf32>
      %cst_18 = arith.constant dense<0.000000e+00> : vector<8x128xf32>
      %47 = vector.multi_reduction <add>, %46, %cst_18 [0] : vector<1x8x128xf32> to vector<8x128xf32>
      %48 = arith.addf %45, %47 : vector<8x128xf32>
      %c0_19 = arith.constant 0 : index
      %c0_20 = arith.constant 0 : index
      %49 = vector.load %arg6[%c0_19, %c0_20] : memref<8x128xf32, #tpu.memory_space<vmem>>, vector<8x128xf32>
      tpu.vector_store %arg6[%c0_19, %c0_20], %48 {strides = array<i32>} : memref<8x128xf32, #tpu.memory_space<vmem>>, vector<8x128xf32>,
    } else {
    }
    %c0_i32_12 = arith.constant 0 : i32
    %35 = arith.cmpi eq, %arg1, %c0_i32_12 : i32
    %36 = arith.extui %35 : i1 to i32
    %c0_i32_13 = arith.constant 0 : i32
    %37 = arith.cmpi ne, %36, %c0_i32_13 : i32
    scf.if %37 {
      %c0_14 = arith.constant 0 : index
      %c0_15 = arith.constant 0 : index
      %38 = vector.load %arg4[%c0_14, %c0_15] : memref<1x128xf32, #tpu.memory_space<vmem>>, vector<1x128xf32>
      %c0_16 = arith.constant 0 : index
      %c0_17 = arith.constant 0 : index
      %39 = vector.load %arg6[%c0_16, %c0_17] : memref<8x128xf32, #tpu.memory_space<vmem>>, vector<8x128xf32>
      %40 = vector.broadcast %38 : vector<1x128xf32> to vector<8x128xf32>
      %41 = arith.mulf %39, %40 : vector<8x128xf32>
      %42 = vector.shape_cast %41 : vector<8x128xf32> to vector<1x8x128xf32>
      %cst_18 = arith.constant dense<0.000000e+00> : vector<1xf32>
      %43 = vector.multi_reduction <add>, %42, %cst_18 [1, 2] : vector<1x8x128xf32> to vector<1xf32>
      %44 = vector.shape_cast %43 : vector<1xf32> to vector<1x1x1xf32>
      %45 = vector.extract %44[0, 0, 0] : f32 from vector<1x1x1xf32>
      %46 = vector.broadcast %45 : f32 to vector<8x128xf32>
      %c0_19 = arith.constant 0 : index
      %c0_20 = arith.constant 0 : index
      %47 = vector.load %arg5[%c0_19, %c0_20] : memref<8x128xf32, #tpu.memory_space<vmem>>, vector<8x128xf32>
      tpu.vector_store %arg5[%c0_19, %c0_20], %46 {strides = array<i32>} : memref<8x128xf32, #tpu.memory_space<vmem>>, vector<8x128xf32>,
    } else {
    }
    return
  }
  func.func @transform_0(%arg0: i32, %arg1: i32) -> (i32, i32) {
    %c1_i32 = arith.constant 1 : i32
    %0 = arith.muli %arg0, %c1_i32 : i32
    %1 = arith.addi %0, %arg1 : i32
    %c0_i32 = arith.constant 0 : i32
    %c0_i32_0 = arith.constant 0 : i32
    return %1, %c0_i32 : i32, i32
  }
  func.func @transform_1(%arg0: i32, %arg1: i32) -> (i32, i32) {
    %c1_i32 = arith.constant 1 : i32
    %0 = arith.muli %arg0, %c1_i32 : i32
    %1 = arith.addi %0, %arg1 : i32
    %c0_i32 = arith.constant 0 : i32
    %c0_i32_0 = arith.constant 0 : i32
    return %1, %c0_i32 : i32, i32
  }
  func.func @transform_2(%arg0: i32, %arg1: i32) -> (i32, i32) {
    %c0_i32 = arith.constant 0 : i32
    %c0_i32_0 = arith.constant 0 : i32
    %c0_i32_1 = arith.constant 0 : i32
    return %c0_i32, %c0_i32_0 : i32, i32
  }
  func.func @transform_3(%arg0: i32, %arg1: i32) -> (i32, i32) {
    %c0_i32 = arith.constant 0 : i32
    %c0_i32_0 = arith.constant 0 : i32
    return %arg0, %c0_i32 : i32, i32
  }
}

</mosaic_0001>

<bundles_post_ra>
// kernel: tpu_custom_call.1
= control target key start
LH: loop header
LB: loop body
LE: loop exit
PB: predicated region body
PF: predicated region fallthrough
CT: control target
= control target key end

     0   :  { %8 = vsyncpa [#allocation4], 0  ;;  %s945_s0 = inlined_call_operand.hbm [shape: f32[16,128], index: 0, kind: input, shape index: {}]   ;;  %s946_s1 = inlined_call_operand.hbm [shape: f32[16,128], index: 1, kind: input, shape index: {}]   ;;  %s947_s2 = inlined_call_operand.vmem [shape: f32[1,128], index: 2, kind: input, shape index: {}]   ;;  %s948_s3 = inlined_call_operand.hbm [shape: f32[16,128], index: 3, kind: output, shape index: {}]  }
   0x1   :  { %10 = vsyncpa [#allocation4 + $0x1], 0 }
   0x2   :  { %11 = vsyncpa [#allocation7], 0 }
   0x3   :  { %13 = vsyncpa [#allocation7 + $0x1], 0 }
   0x4   :  { %14 = vsyncpa [#allocation5], 0 }
   0x5   :  { %16 = vsyncpa [#allocation5 + $0x1], 0  ;;  %s704_s12 = smov 0   ;;  %s706_s13 = smov 0  }
   0x6   :  { %s708_s14 = smov 0   ;;  %s710_s15 = smov 0  }
   0x7   :  { %s712_s16 = smov 0   ;;  %s714_s17 = smov 0  }
   0x8 LB: > { %s433_s18 = sadd.s32 4294967295, %s678_s17   ;;  %s434_s19 = sadd.s32 4294967294, %s678_s17   ;;  %s678_s17 = sphi %s714_s17, %s22_s17   ;;  %s674_s16 = sphi %s712_s16, %s968_s16   ;;  %s670_s15 = sphi %s710_s15, %s967_s15   ;;  %s666_s14 = sphi %s708_s14, %s966_s14   ;;  %s662_s13 = sphi %s706_s13, %s965_s13   ;;  %s658_s12 = sphi %s704_s12, %s964_s12  }
   0x9   : > { %s34_s20 = sadd.s32 1, %s674_s16  ;;  %s43_s21 = sadd.s32 1, %s666_s14 }
   0xa   : > { %p36_p0 = scmp.ge.s32.totalorder %s34_s20, 2  ;;  %p50_p1 = scmp.ne.s32.totalorder %s666_s14, %s662_s13 }
   0xb   : > { %p51_p2 = scmp.eq.s32.totalorder %s678_s17, 0  ;;  %p56_p3 = scmp.ne.s32.totalorder %s662_s13, %s658_s12 }
   0xc   : > { %s970_s20 = smov (%p36_p0, %s34_s20), 0  ;;  %p57_p5 = scmp.eq.s32.totalorder %s433_s18, 0 }
   0xd   : > { %p745_p4 = por %p51_p2, %p50_p1  ;;  %s40_s23 = ssub.s32 %s674_s16, %s970_s20 }
   0xe   : > { %p129_p6 = scmp.eq.s32.totalorder %s433_s18, 1  ;;  %p41_p7 = scmp.eq.s32.totalorder %s40_s23, 0 }
   0xf   : > { %p751_p8 = por %p57_p5, %p56_p3  ;;  %p135_p10 = scmp.eq.s32.totalorder %s434_s19, 1 }
  0x10   : > { %p755_p9 = por %p129_p6, %p50_p1  ;;  %p473_p13 = scmp.lt.s32.totalorder %s678_s17, 2 }
  0x11   : > { %s952_s24 = scalar_select %p751_p8, 1, 0 }
  0x12   : > { %s953_s25 = scalar_select %p755_p9, 1, 0 }
  0x13   : > { %s760_s26 = scalar_select %p41_p7, %s666_s14, %s43_s21  }
  0x14   : > { %p762_p11 = por %p135_p10, %p56_p3  ;;  %s769_s28 = sand.u32 1, %s666_s14  }
  0x15   : > { %s437_s29 = sshll.u32 %s769_s28, 3  ;;  %s438_s30 = sshll.u32 %s674_s16, 7 }
  0x16   : > { %s954_s27 = scalar_select %p762_p11, 1, 0 }
  0x17   : > { %s778_s6 = scalar_lea.hbm %s945_s0, %s438_s30  ;;  %s162_s7 = scalar_lea.vmem [#allocation3], %s437_s29 }
  0x18   : > { %s170_s8 = sshll.u32 %s162_s7, 4  ;;  %p786_p0 = pnand %p473_p13, %p745_p4  ;;  %s782_s8 = int_to_ptr.vmem [resolvable:$true] %s170_s8 }
  0x19   : > { %s159_s10 = scalar_lea.sflag [#allocation4], %s769_s28  ;;  %s532_s11 = scalar_lea.hbm %s778_s6, 128 }
  0x1a   : > { %p533_p3 = scmp.ne.s32.totalorder %s778_s6, %s532_s11  ;;  %p534_p5 = pneg %p786_p0 }
  0x1b   : > { %s537_s21 = scalar_lea.hbm %s945_s0, 256  ;;  %p538_p4 = scmp.lt.u32.totalorder %s778_s6, %s945_s0 }
  0x1c   : > { %p535_p6 = pnand %p534_p5, %p533_p3  ;;  %p539_p10 = scmp.lt.u32.totalorder %s537_s21, %s532_s11 }
  0x1d   : > { %p541_p12 = scmp.lt.u32.totalorder %s532_s11, %s778_s6 }
  0x1e   : > { %p536_p7 = pneg %p535_p6  ;;  %p540_p13 = por %p539_p10, %p538_p4 }
  0x20   : > { %p542_p1 = por %p541_p12, %p540_p13 }
  0x22   : > { %p543_p2 = pnand %p542_p1, %p536_p7 }
  0x24   : > { %546 = shalt.err (!%p543_p2)
}
  0x25   : > { %s547_s4 = scalar_lea.vmem %s782_s8, 128  ;;  %s680_s5 = smov [#allocation3]  }
  0x26   : > { %p548_p3 = scmp.ne.s32.totalorder %s782_s8, %s547_s4  ;;  %s552_s7 = sshll.u32 %s680_s5, 4  ;;  %s553_s7 = int_to_ptr.vmem [resolvable:$false] %s552_s7 }
  0x27   : > { %s554_s18 = scalar_lea.vmem %s553_s7, 256  ;;  %p555_p9 = scmp.lt.s32.totalorder %s782_s8, %s553_s7 }
  0x28   : > { %p550_p6 = pnand %p548_p3, %p534_p5  ;;  %p556_p4 = scmp.lt.s32.totalorder %s554_s18, %s547_s4 }
  0x2a   : > { %p551_p11 = pneg %p550_p6  ;;  %p557_p10 = por %p556_p4, %p555_p9 }
  0x2c   : > { %p558_p12 = pnand %p557_p10, %p551_p11 }
  0x2e   : > { %561 = shalt.err (!%p558_p12)
}
  0x2f   : > { %465 = dma.hbm_to_vmem [thread:$0]  (!%p786_p0), %s778_s6, 128, %s782_s8, %s159_s10  }
  0x30   : > { %p956_p1 = scmp.lt.s32.totalorder %s678_s17, 3  ;;  %p957_p2 = scmp.ge.s32.totalorder %s678_s17, 1 }
  0x31   : > { %s831_s22 = scalar_lea.hbm %s946_s1, %s438_s30  ;;  %s181_s23 = scalar_lea.vmem [#allocation6], %s437_s29 }
  0x32   : > { %p822_p7 = pnand %p957_p2, %p956_p1  ;;  %s189_s4 = sshll.u32 %s181_s23, 4  ;;  %s190_s4 = int_to_ptr.vmem [resolvable:$true] %s189_s4 }
  0x33   : > { %s178_s6 = scalar_lea.sflag [#allocation7], %s769_s28  ;;  %s562_s8 = scalar_lea.hbm %s831_s22, 128 }
  0x34   : > { %s958_s11 = scalar_select %p822_p7, 1, 0 }
  0x35   : > { %p563_p9 = scmp.ne.s32.totalorder %s831_s22, %s562_s8  ;;  %s567_s30 = scalar_lea.hbm %s946_s1, 256 }
  0x36   : > { %p568_p3 = scmp.lt.u32.totalorder %s831_s22, %s946_s1  ;;  %p569_p6 = scmp.lt.u32.totalorder %s567_s30, %s562_s8 }
  0x37   : > { %p565_p11 = pnand %p563_p9, %p534_p5  ;;  %p571_p10 = scmp.lt.u32.totalorder %s562_s8, %s831_s22 }
  0x38   : > { %p570_p4 = por %p569_p6, %p568_p3 }
  0x39   : > { %p566_p13 = pneg %p565_p11 }
  0x3a   : > { %p572_p12 = por %p571_p10, %p570_p4 }
  0x3c   : > { %p573_p1 = pnand %p572_p12, %p566_p13 }
  0x3e   : > { %576 = shalt.err (!%p573_p1)
}
  0x3f   : > { %s577_s28 = scalar_lea.vmem %s190_s4, 128  ;;  %s681_s29 = smov [#allocation6]  }
  0x40   : > { %p578_p2 = scmp.ne.s32.totalorder %s190_s4, %s577_s28  ;;  %s582_s19 = sshll.u32 %s681_s29, 4  ;;  %s583_s19 = int_to_ptr.vmem [resolvable:$false] %s582_s19 }
  0x41   : > { %s584_s21 = scalar_lea.vmem %s583_s19, 256  ;;  %p585_p8 = scmp.lt.s32.totalorder %s190_s4, %s583_s19 }
  0x42   : > { %p580_p9 = pnand %p578_p2, %p534_p5  ;;  %p586_p7 = scmp.lt.s32.totalorder %s584_s21, %s577_s28 }
  0x44   : > { %p581_p11 = pneg %p580_p9  ;;  %p587_p3 = por %p586_p7, %p585_p8 }
  0x46   : > { %p588_p6 = pnand %p587_p3, %p581_p11 }
  0x48   : > { %591 = shalt.err (!%p588_p6)
}
  0x49   : > { %468 = dma.hbm_to_vmem [thread:$0]  (!%p786_p0), %s831_s22, 128, %s190_s4, %s178_s6  }
  0x4a   : > { %p959_p13 = scmp.ne.s32.totalorder %s958_s11, 0 }
  0x4b   : > { %s858_s23 = sand.u32 (!%p959_p13), 1, %s662_s13   ;;  %p960_p8 = scmp.ne.s32.totalorder (!%p959_p13), %s952_s24, 0 }
  0x4c   : > { %198 = sbr.rel (%p959_p13) target bundleno = 379 (0x17b), region = 32  ;;  %s861_s8 = sshll.u32 (!%p959_p13), %s858_s23, 3 }
  0x4d   : > { %s201_s10 = scalar_lea.sflag (!%p959_p13), [#allocation4], %s858_s23  ;;  %s204_s5 = scalar_lea.vmem (!%p959_p13), [#allocation3], %s861_s8 }
  0x53   : > { %645 = dma.done.wait (%p960_p8), %s201_s10, 128  }
  0x54   : > { %647 = vsyncadd (%p960_p8), %s201_s10, 4294967168  ;;  %s210_s9 = scalar_lea.sflag [#allocation7], %s858_s23  ;;  %s213_s11 = scalar_lea.vmem [#allocation6], %s861_s8 }
  0x55   : > { %649 = dma.done.wait (%p960_p8), %s210_s9, 128  }
  0x56   : > { %651 = vsyncadd (%p960_p8), %s210_s9, 4294967168  ;;  %s446_s22 = sshll.u32 %s670_s15, 3  ;;  %v682_v0 = vmov 0.0   ;;  %v248_v1 = vld [vmem:[%s204_s5] sm:$0xff]  ;;  %v249_v9 = vld [vmem:[%s213_s11] sm:$0xff]  ;;  %s240_s24 = scalar_lea.vmem [#allocation8], %s861_s8 }
  0x57   : > { %247 = vst [vmem:[#allocation2] sm:$0xff] %v682_v0  ;;  %s878_s4 = sadd.s32 8, %s446_s22  ;;  %v445_v2 = vmul.f32 -1.442695, %v248_v1  ;;  %v260_v12 = vsub.f32 1.0, %v249_v9 }
  0x58   : > { %p447_p0 = scmp.gt.s32.totalorder %s878_s4, 4 }
  0x59   : > { %524 = vpow2.f32 %v445_v2 }
  0x5e   : > { %v276_v19 = vld [vmem:[#allocation2] sm:$0xff] (!%p447_p0) }
  0x63   : > { %v525_v3 = vpop.eup %524 }
  0x64   : > { %v253_v4 = vadd.f32 1.0, %v525_v3 }
  0x66   : > { %526 = vrcp.f32 %v253_v4 }
  0x70   : > { %v527_v5 = vpop.eup %526 }
  0x71   : > { %v256_v6 = vadd.f32 1e-08, %v527_v5  ;;  %v261_v7 = vsub.f32 1.0, %v527_v5 }
  0x73   : > { %528 = vlog2.f32 %v256_v6  ;;  %v262_v8 = vadd.f32 1e-08, %v261_v7 }
  0x75   : > { %530 = vlog2.f32 %v262_v8 }
  0x7d   : > { %v529_v10 = vpop.eup %528 }
  0x7e   : > { %v258_v11 = vmul.f32 0.6931472, %v529_v10 }
  0x7f   : > { %v531_v13 = vpop.eup %530 }
  0x80   : > { %v259_v14 = vmul.f32 %v258_v11, %v249_v9  ;;  %v264_v15 = vmul.f32 0.6931472, %v531_v13  ;;  %275 = sbr.rel (%p447_p0) target bundleno = 139 (0x8b), region = 48 }
  0x82   : > { %v265_v16 = vmul.f32 %v264_v15, %v260_v12 }
  0x84   : > { %v266_v17 = vadd.f32 %v265_v16, %v259_v14 }
  0x86   : > { %v267_v18 = vsub.f32 0.0, %v266_v17 }
  0x88   : > { %v278_v20 = vadd.f32 %v276_v19, %v267_v18 }
  0x8a   : > { %279 = vst [vmem:[#allocation2] sm:$0xff] %v278_v20 }
  0x8b PF: > { %p448_p5 = scmp.le.s32.totalorder %s878_s4, 4 }
  0x8c   : > { %v283_v21 = vlaneseq (!%p448_p5)  ;;  %v285_v22 = vstv (!%p448_p5), %s446_s22 }
  0x8d   : > { %282 = sbr.rel (%p448_p5) target bundleno = 151 (0x97), region = 52 }
  0x8e   : > { %v284_v23 = vshrl.u32 (!%p448_p5), %v283_v21, 7 }
  0x90   : > { %v286_v24 = vadd.s32 (!%p448_p5), %v285_v22, %v284_v23 }
  0x91   : > { %v289_v25 = vld [vmem:[#allocation2] sm:$0xff] (!%p448_p5) }
  0x92   : > { %vm287_vm0 = vcmp.lt.s32.totalorder (!%p448_p5), %v286_v24, 4 }
  0x93   : > { %v288_v26 = vsel (!%p448_p5), %vm287_vm0, %v267_v18, 0.0 }
  0x94   : > { %v291_v27 = vadd.f32 %v289_v25, %v288_v26 }
  0x96   : > { %292 = vst [vmem:[#allocation2] sm:$0xff] %v291_v27 }
  0x97 PF: > { %v449_v28 = vld [vmem:[%s947_s2] ss:$0 sm:$0xff]  ;;  %s451_s7 = sshll.u32 %s670_s15, 7  ;;  %s330_s18 = sshll.u32 %s240_s24, 4  ;;  %s896_s18 = int_to_ptr.vmem [resolvable:$true] %s330_s18 }
  0x98   : > { %s894_s19 = scalar_lea.hbm %s948_s3, %s451_s7  ;;  %s317_s10 = scalar_lea.sflag [#allocation5], %s858_s23 }
  0x99   : > { %s592_s5 = scalar_lea.vmem %s896_s18, 128  ;;  %p961_p4 = scmp.ne.s32.totalorder %s953_s25, 0 }
  0x9a   : > { %p593_p7 = scmp.ne.s32.totalorder %s896_s18, %s592_s5  ;;  %s683_s15 = smov [#allocation8]  }
  0x9b   : > { %s596_s9 = sshll.u32 %s683_s15, 4  ;;  %s597_s9 = int_to_ptr.vmem [resolvable:$false] %s596_s9 }
  0x9c   : > { %p594_p10 = pnand %p593_p7, %p961_p4  ;;  %s598_s11 = scalar_lea.vmem %s597_s9, 256 }
  0x9d   : > { %v297_v29 = vld [vmem:[#allocation2] sm:$0xff]  ;;  %p599_p1 = scmp.lt.s32.totalorder %s896_s18, %s597_s9  ;;  %p600_p2 = scmp.lt.s32.totalorder %s598_s11, %s592_s5 }
  0x9e   : > { %v304_v30 = vmul.f32 %v449_v28, %v297_v29  ;;  %p595_p12 = pneg %p594_p10 }
  0x9f   : > { %p601_p9 = por %p600_p2, %p599_p1 }
  0xa0   : > { %305 = vadd.xlane.f32.xlu0 %v304_v30 }
  0xa1   : > { %p602_p11 = pnand %p601_p9, %p595_p12 }
 0x12d   : > { %v306_v31 = vpop.xlane.xlu0 %305 }
 0x12e   : > { %v307_v32 = vrot.slane %v306_v31, 4 }
 0x130   : > { %v308_v33 = vadd.f32 %v307_v32, %v306_v31 }
 0x132   : > { %v309_v34 = vrot.slane %v308_v33, 2 }
 0x134   : > { %v310_v35 = vadd.f32 %v309_v34, %v308_v33 }
 0x136   : > { %v311_v36 = vrot.slane %v310_v35, 1 }
 0x138   : > { %v312_v37 = vadd.f32 %v311_v36, %v310_v35 }
 0x13a   : > { %454 = vpush %v312_v37 }
 0x16b   : > { %s455_s21 = spop %454 }
 0x16c   : > { %v314_v38 = vstv %s455_s21 }
 0x16d   : > { %315 = vst [vmem:[%s240_s24] sm:$0xff] %v314_v38 }
 0x16e   : > { %605 = shalt.err (!%p602_p11)
}
 0x16f   : > { %s606_s23 = scalar_lea.hbm %s894_s19, 128  ;;  %s610_s4 = scalar_lea.hbm %s948_s3, 256 }
 0x170   : > { %p607_p3 = scmp.ne.s32.totalorder %s894_s19, %s606_s23  ;;  %p611_p8 = scmp.lt.u32.totalorder %s894_s19, %s948_s3 }
 0x171   : > { %p612_p0 = scmp.lt.u32.totalorder %s610_s4, %s606_s23  ;;  %p614_p7 = scmp.lt.u32.totalorder %s606_s23, %s894_s19 }
 0x172   : > { %p608_p6 = pnand %p607_p3, %p961_p4 }
 0x173   : > { %p613_p5 = por %p612_p0, %p611_p8 }
 0x174   : > { %p609_p13 = pneg %p608_p6 }
 0x175   : > { %p615_p10 = por %p614_p7, %p613_p5 }
 0x177   : > { %p616_p12 = pnand %p615_p10, %p609_p13 }
 0x179   : > { %619 = shalt.err (!%p616_p12)
}
 0x17a   : > { %460 = dma.vmem_to_hbm [thread:$0]  (%p961_p4), %s896_s18, 128, %s894_s19, %s317_s10  }
 0x17b PF: > { %s342_s30 = sand.u32 1, %s658_s12   ;;  %p962_p1 = scmp.ne.s32.totalorder %s954_s27, 0 }
 0x17c   : > { %p963_p2 = scmp.ge.s32.totalorder %s678_s17, 2  ;;  %s343_s7 = scalar_lea.sflag [#allocation5], %s342_s30 }
 0x17e   : > { %p470_p9 = pnand %p963_p2, %p962_p1 }
 0x180   : > { %653 = dma.done.wait (!%p470_p9), %s343_s7, 128  }
 0x181   : > { %655 = vsyncadd (!%p470_p9), %s343_s7, 4294967168  ;;  %s22_s17 = sadd.s32 1, %s678_s17   ;;  %s964_s12 = smov %s662_s13 }
 0x182   : > { %p19_p11 = scmp.ge.s32.totalorder %s22_s17, 4   ;;  %s965_s13 = smov %s666_s14 }
 0x183   : > { %s966_s14 = smov %s760_s26  ;;  %s967_s15 = smov %s674_s16 }
 0x184   : > { %s968_s16 = smov %s970_s20  ;;  %21 = sbr.rel (!%p19_p11) target bundleno = 8 (0x8), region = 106 }
 0x18b   :  { %348 = vsyncpa [#allocation4], 1 }
 0x18c   :  { %350 = vsyncpa [#allocation4 + $0x1], 1 }
 0x18d   :  { %351 = vsyncpa [#allocation7], 1 }
 0x18e   :  { %353 = vsyncpa [#allocation7 + $0x1], 1 }
 0x18f   :  { %354 = vsyncpa [#allocation5], 1 }
 0x190   :  { %356 = vsyncpa [#allocation5 + $0x1], 1 }

</bundles_post_ra>
